<compile_context>
chip_gen: v5e
topology: v5e:2x2
jax: 0.10.0
libtpu: 0.0.40
codegen_flags: <defaults>
</compile_context>

<pallas_src>
import jax
import jax.numpy as jnp
from jax.experimental import pallas as pl
from jax.experimental.pallas import tpu as pltpu


def _round_up(x, m):
    return (x + m - 1) // m * m


def _cdiv(a, b):
    return -(-a // b)


# ---------------------------------------------------------------------------
# Kernels
# ---------------------------------------------------------------------------
def _linear_kernel(x_ref, w_ref, b_ref, o_ref):
    # x_ref: (tm, Fp) ; w_ref: (Fp, tn) canonical (K, N) ; b_ref: (1, tn) f32.
    acc = jnp.dot(x_ref[...], w_ref[...], preferred_element_type=jnp.float32)
    o_ref[...] = (acc + b_ref[...]).astype(o_ref.dtype)


def _linear_kernel_ktiled(x_ref, w_ref, b_ref, o_ref, acc_ref):
    # Grid axis 2 is the feature (K) reduction; accumulate in f32 scratch.
    k = pl.program_id(2)

    @pl.when(k == 0)
    def _():
        acc_ref[...] = jnp.zeros_like(acc_ref)

    acc_ref[...] += jnp.dot(x_ref[...], w_ref[...],
                            preferred_element_type=jnp.float32)

    @pl.when(k == pl.num_programs(2) - 1)
    def _():
        o_ref[...] = (acc_ref[...] + b_ref[...]).astype(o_ref.dtype)


# ---------------------------------------------------------------------------
# Planning helpers
# ---------------------------------------------------------------------------
def _vmem_sizing():
    """Generation-aware VMEM sizing: (tile-plan budget, compiler vmem limit)."""
    try:
        cap = int(pltpu.get_tpu_info().vmem_capacity_bytes)
    except Exception:
        cap = 64 << 20  # conservative: v7x has 64 MiB per TensorCore
    limit = min(int(cap * 0.75), cap - (8 << 20))  # leave compiler headroom
    limit = max(limit, 16 << 20)
    budget = int(limit * 2 / 3)  # planner counts explicit double buffers only
    return budget, limit


def _tile_plan(B, Fp, Cp, itemsize, budget):
    """Return (tm, tn, tk). tn == Cp => weight fully resident; tk == Fp => no K tiling."""
    min_tm = {1: 32, 2: 16}.get(itemsize, 8)
    tm_cap = max(min_tm, _round_up(B, min_tm))
    cands, seen = [], set()
    for c in (1024, 512, 256, 128, 64, 32, 16, 8):
        c = min(c, tm_cap)
        if c >= min_tm and c not in seen:
            seen.add(c)
            cands.append(c)

    def fits(tm, tn, tk, with_acc):
        need = 2 * (tm * tk + tk * tn + tm * tn) * itemsize + 2 * tn * 4
        if with_acc:
            need += tm * tn * 4
        return need <= budget

    # 1) Weight fully resident in VMEM (fetched from HBM exactly once).
    for tm in cands:
        if fits(tm, Cp, Fp, with_acc=False):
            return tm, Cp, Fp
    # 2) Class (N) tiling with a full-F contraction per tile.
    for tn in (512, 256, 128):
        if tn > Cp:
            continue
        for tm in cands:
            if fits(tm, tn, Fp, with_acc=False):
                return tm, tn, Fp
    # 3) K tiling with an f32 accumulator (very large feature_dim).
    for tk in (4096, 2048, 1024, 512, 256, 128):
        if tk >= Fp:
            continue
        for tn in (512, 256, 128):
            tn = min(tn, Cp)
            for tm in cands:
                if fits(tm, tn, tk, with_acc=True):
                    return tm, tn, tk
    return min_tm, min(128, Cp), 128


# ---------------------------------------------------------------------------
# Wrapper
# ---------------------------------------------------------------------------
def linear_probing(x, weight, bias, *, tm=None, tn=None, tk=None):
    """Pallas implementation of LinearProbing.forward (y = x @ W.T + b).

    x:      (B, feature_dim)
    weight: (num_classes, feature_dim)  -- torch nn.Linear layout
    bias:   (num_classes,)
    returns (B, num_classes)
    """
    B, F = x.shape
    C, F_w = weight.shape
    assert F_w == F and bias.shape == (C,)
    dtype = x.dtype
    itemsize = jnp.dtype(dtype).itemsize
    min_tm = {1: 32, 2: 16}.get(itemsize, 8)

    budget, vmem_limit = _vmem_sizing()

    Fp = _round_up(F, 128)
    Cp = _round_up(C, 128)

    auto_tm = tm is None
    ptm, ptn, ptk = _tile_plan(B, Fp, Cp, itemsize, budget)
    tm = ptm if tm is None else tm
    tn = ptn if tn is None else min(tn, Cp)
    tk = ptk if tk is None else min(tk, Fp)

    # The K axis is a reduction: tiles must cover it exactly (zero-pad up).
    if tk < Fp:
        Fp = _round_up(F, tk)
    else:
        tk = Fp

    gi = _cdiv(B, tm)
    gj = _cdiv(Cp, tn)
    gk = Fp // tk

    # v7x has 2 TensorCores sharded over "parallel" axes: ensure >= 2 blocks
    # along the batch axis when the grid would otherwise be 1x1.
    if auto_tm and gi == 1 and gj == 1 and B > min_tm:
        tm_half = max(min_tm, _round_up(_cdiv(tm, 2), min_tm))
        if _cdiv(B, tm_half) >= 2:
            tm = tm_half
            gi = _cdiv(B, tm)

    # Padding policy:
    #  - F (reduction): zero-pad so out-of-bounds data never enters the dot.
    #  - C (output lanes): zero-pad weight/bias so stores are unmasked 128-lane.
    #  - B: never padded (avoids a full HBM copy of x); edge blocks are clipped.
    xp = x if Fp == F else jnp.pad(x, ((0, 0), (0, Fp - F)))
    wt = weight.T  # one-time canonical (K, N) layout; amortizes for a reused parameter
    wp = wt if (Fp == F and Cp == C) else jnp.pad(wt, ((0, Fp - F), (0, Cp - C)))
    bp = (bias if Cp == C else jnp.pad(bias, (0, Cp - C)))
    bp = bp.reshape(1, Cp).astype(jnp.float32)

    # Grid-order by HBM traffic: batch-outer re-reads the weight (gi-1) extra
    # times; class-outer re-reads x (gj-1) extra times. Stream the cheaper one.
    batch_outer = (gi - 1) * Cp <= (gj - 1) * B

    out_shape = jax.ShapeDtypeStruct((B, Cp), dtype)
    cost = pl.CostEstimate(
        flops=2 * B * Fp * Cp,
        transcendentals=0,
        bytes_accessed=itemsize * (B * Fp + Fp * Cp + B * Cp) + 4 * Cp,
    )

    if gk == 1:
        if batch_outer:
            grid = (gi, gj)
            x_map = lambda i, j: (i, 0)
            w_map = lambda i, j: (0, j)
            b_map = lambda i, j: (0, j)
            o_map = lambda i, j: (i, j)
        else:
            grid = (gj, gi)
            x_map = lambda j, i: (i, 0)
            w_map = lambda j, i: (0, j)
            b_map = lambda j, i: (0, j)
            o_map = lambda j, i: (i, j)

        out = pl.pallas_call(
            _linear_kernel,
            out_shape=out_shape,
            grid_spec=pltpu.PrefetchScalarGridSpec(
                num_scalar_prefetch=0,
                grid=grid,
                in_specs=[
                    pl.BlockSpec((tm, Fp), x_map),   # activations
                    pl.BlockSpec((Fp, tn), w_map),   # weight (K, N)
                    pl.BlockSpec((1, tn), b_map),    # bias
                ],
                out_specs=pl.BlockSpec((tm, tn), o_map),
            ),
            compiler_params=pltpu.CompilerParams(
                dimension_semantics=("parallel", "parallel"),
                vmem_limit_bytes=int(vmem_limit),
            ),
            cost_estimate=cost,
        )(xp, wp, bp)
    else:
        if batch_outer:
            grid = (gi, gj, gk)
            x_map = lambda i, j, k: (i, k)
            w_map = lambda i, j, k: (k, j)
            b_map = lambda i, j, k: (0, j)
            o_map = lambda i, j, k: (i, j)
        else:
            grid = (gj, gi, gk)
            x_map = lambda j, i, k: (i, k)
            w_map = lambda j, i, k: (k, j)
            b_map = lambda j, i, k: (0, j)
            o_map = lambda j, i, k: (i, j)

        out = pl.pallas_call(
            _linear_kernel_ktiled,
            out_shape=out_shape,
            grid_spec=pltpu.PrefetchScalarGridSpec(
                num_scalar_prefetch=0,
                grid=grid,
                in_specs=[
                    pl.BlockSpec((tm, tk), x_map),
                    pl.BlockSpec((tk, tn), w_map),
                    pl.BlockSpec((1, tn), b_map),
                ],
                out_specs=pl.BlockSpec((tm, tn), o_map),
                scratch_shapes=[pltpu.VMEM((tm, tn), jnp.float32)],
            ),
            compiler_params=pltpu.CompilerParams(
                dimension_semantics=("parallel", "parallel", "arbitrary"),
                vmem_limit_bytes=int(vmem_limit),
            ),
            cost_estimate=cost,
        )(xp, wp, bp)

    return out if Cp == C else out[:, :C]


if __name__ == "__main__":
    key = jax.random.PRNGKey(0)

    # --- small case (LinearProbing(feature_dim=32, num_classes=16), batch=8) ---
    feature_dim, num_classes, batch = 32, 16, 8
    kx, kw, kb, key = jax.random.split(key, 4)
    bound = 1.0 / (feature_dim ** 0.5)
    x = jax.random.normal(kx, (batch, feature_dim), dtype=jnp.float32)
    weight = jax.random.uniform(kw, (num_classes, feature_dim),
                                minval=-bound, maxval=bound, dtype=jnp.float32)
    bias = jax.random.uniform(kb, (num_classes,),
                              minval=-bound, maxval=bound, dtype=jnp.float32)

    out = jax.block_until_ready(linear_probing(x, weight, bias))
    ref = x @ weight.T + bias
    assert out.shape == (batch, num_classes)
    assert jnp.allclose(out, ref, atol=1e-5, rtol=1e-5)

    # --- ragged case: lane padding, output clipping, resident-weight path ---
    B2, F2, C2 = 200, 384, 130
    kx2, kw2, kb2, key = jax.random.split(key, 4)
    bound2 = 1.0 / (F2 ** 0.5)
    x2 = jax.random.normal(kx2, (B2, F2), dtype=jnp.float32)
    w2 = jax.random.uniform(kw2, (C2, F2), minval=-bound2, maxval=bound2,
                            dtype=jnp.float32)
    b2 = jax.random.uniform(kb2, (C2,), minval=-bound2, maxval=bound2,
                            dtype=jnp.float32)

    ref2 = x2 @ w2.T + b2
    out2 = jax.block_until_ready(linear_probing(x2, w2, b2))
    assert out2.shape == (B2, C2)
    assert jnp.allclose(out2, ref2, atol=1e-4, rtol=1e-4)

    # --- forced class + K tiling: exercises the 3-axis accumulator path ---
    out3 = jax.block_until_ready(linear_probing(x2, w2, b2, tm=64, tn=128, tk=128))
    assert out3.shape == (B2, C2)
    assert jnp.allclose(out3, ref2, atol=1e-4, rtol=1e-4)

    print("KERNEL_OK")
</pallas_src>

<mosaic_0001>
module attributes {stable_mosaic.version = 11 : i64} {
  func.func @_linear_kernel(%arg0: i32, %arg1: i32, %arg2: memref<8x128xf32, #tpu.memory_space<vmem>>, %arg3: memref<128x128xf32, #tpu.memory_space<vmem>>, %arg4: memref<1x128xf32, #tpu.memory_space<vmem>>, %arg5: memref<8x128xf32, #tpu.memory_space<vmem>>) attributes {dimension_semantics = [#tpu.dimension_semantics<parallel>, #tpu.dimension_semantics<parallel>], iteration_bounds = array<i64: 1, 1>, scalar_prefetch = 0 : i64, scratch_operands = 0 : i64, tpu.core_type = #tpu.core_type<tc>, window_params = [{transform_indices = @transform_0, window_bounds = array<i64: 8, 128>}, {transform_indices = @transform_1, window_bounds = array<i64: 128, 128>}, {transform_indices = @transform_2, window_bounds = array<i64: 1, 128>}, {transform_indices = @transform_3, window_bounds = array<i64: 8, 128>}]} {
    %c0 = arith.constant 0 : index
    %c0_0 = arith.constant 0 : index
    %0 = vector.load %arg2[%c0, %c0_0] : memref<8x128xf32, #tpu.memory_space<vmem>>, vector<8x128xf32>
    %c0_1 = arith.constant 0 : index
    %c0_2 = arith.constant 0 : index
    %1 = vector.load %arg3[%c0_1, %c0_2] : memref<128x128xf32, #tpu.memory_space<vmem>>, vector<128x128xf32>
    %cst = arith.constant dense<0.000000e+00> : vector<8x128xf32>
    %2 = tpu.matmul %0, %1, %cst {dimension_numbers = #tpu.dot_dimension_numbers<[1], [0], [0], [1], [0, 0, 1, 1], [], []>} : vector<8x128xf32>, vector<128x128xf32>, vector<8x128xf32> -> vector<8x128xf32>
    %c0_3 = arith.constant 0 : index
    %c0_4 = arith.constant 0 : index
    %3 = vector.load %arg4[%c0_3, %c0_4] : memref<1x128xf32, #tpu.memory_space<vmem>>, vector<1x128xf32>
    %4 = vector.broadcast %3 : vector<1x128xf32> to vector<8x128xf32>
    %5 = arith.addf %2, %4 : vector<8x128xf32>
    %c0_5 = arith.constant 0 : index
    %c0_6 = arith.constant 0 : index
    %6 = vector.load %arg5[%c0_5, %c0_6] : memref<8x128xf32, #tpu.memory_space<vmem>>, vector<8x128xf32>
    tpu.vector_store %arg5[%c0_5, %c0_6], %5 {strides = array<i32>} : memref<8x128xf32, #tpu.memory_space<vmem>>, vector<8x128xf32>,
    return
  }
  func.func @transform_0(%arg0: i32, %arg1: i32) -> (i32, i32) {
    %c0_i32 = arith.constant 0 : i32
    %c0_i32_0 = arith.constant 0 : i32
    return %arg0, %c0_i32 : i32, i32
  }
  func.func @transform_1(%arg0: i32, %arg1: i32) -> (i32, i32) {
    %c0_i32 = arith.constant 0 : i32
    %c0_i32_0 = arith.constant 0 : i32
    return %c0_i32, %arg1 : i32, i32
  }
  func.func @transform_2(%arg0: i32, %arg1: i32) -> (i32, i32) {
    %c0_i32 = arith.constant 0 : i32
    %c0_i32_0 = arith.constant 0 : i32
    return %c0_i32, %arg1 : i32, i32
  }
  func.func @transform_3(%arg0: i32, %arg1: i32) -> (i32, i32) {
    %c0_i32 = arith.constant 0 : i32
    return %arg0, %arg1 : i32, i32
  }
}

</mosaic_0001>

<bundles_post_ra>
// kernel: tpu_custom_call.1
= control target key start
LH: loop header
LB: loop body
LE: loop exit
PB: predicated region body
PF: predicated region fallthrough
CT: control target
= control target key end

     0   :  { %8 = vsyncpa [#allocation3], 0  ;;  %s226_s0 = inlined_call_operand.hbm [shape: f32[8,128], index: 0, kind: input, shape index: {}]   ;;  %s227_s1 = inlined_call_operand.hbm [shape: f32[128,128], index: 1, kind: input, shape index: {}]   ;;  %s228_s2 = inlined_call_operand.vmem [shape: f32[1,128], index: 2, kind: input, shape index: {}]   ;;  %s229_s3 = inlined_call_operand.hbm [shape: f32[8,128], index: 3, kind: output, shape index: {}]  }
   0x1   :  { %9 = vsyncpa [#allocation6], 0 }
   0x2   :  { %10 = vsyncpa [#allocation4], 0  ;;  %s16_s14 = sshll.u32 %s226_s0, 4  ;;  %s189_s15 = smov [#allocation2]   ;;  %s17_s14 = int_to_ptr.hbm [resolvable:$true] %s16_s14 }
   0x3   :  { %s18_s16 = sshll.u32 %s189_s15, 4  ;;  %s26_s19 = sshll.u32 %s227_s1, 4  ;;  %s19_s16 = int_to_ptr.vmem [resolvable:$true] %s18_s16  ;;  %s27_s19 = int_to_ptr.hbm [resolvable:$true] %s26_s19 }
   0x4   :  { %21 = dma.hbm_to_vmem [thread:$0]  %s17_s14, 128, %s19_s16, [#allocation3]  }
   0x5   :  { %s190_s20 = smov [#allocation5]   ;;  %s191_s22 = smov 128  }
   0x6   :  { %s28_s21 = sshll.u32 %s190_s20, 4  ;;  %s192_s23 = smov 8   ;;  %s29_s21 = int_to_ptr.vmem [resolvable:$true] %s28_s21 }
   0x7   :  { %34 = dma.hbm_to_vmem [thread:$0]  %s27_s19, 2048, %s29_s21, [#allocation6], %s191_s22, %s191_s22, %s192_s23  }
   0x8   :  { %183 = dma.done.wait [#allocation3], 128  }
   0x9   :  { %184 = vsyncadd [#allocation3], 4294967168 }
   0xa   :  { %185 = dma.done.wait [#allocation6], 2048  }
   0xb   :  { %186 = vsyncadd [#allocation6], 4294965248  ;;  %v61_v0 = vld [vmem:[#allocation5 + $0x78] sm:$0xff]  ;;  %v60_v1 = vld [vmem:[#allocation5 + $0x70] sm:$0xff]  ;;  %s193_s24 = smov [#allocation7]   ;;  %s94_s28 = sshll.u32 %s229_s3, 4  ;;  %s95_s28 = int_to_ptr.hbm [resolvable:$true] %s94_s28 }
   0xc   :  { %66 = vmatpush.msra.mxu0 %v61_v0  ;;  %v59_v2 = vld [vmem:[#allocation5 + $0x68] sm:$0xff]  ;;  %v58_v3 = vld [vmem:[#allocation5 + $0x60] sm:$0xff]  ;;  %v57_v4 = vld [vmem:[#allocation5 + $0x58] sm:$0xff]  ;;  %s92_s25 = sshll.u32 %s193_s24, 4  ;;  %s93_s25 = int_to_ptr.vmem [resolvable:$true] %s92_s25 }
   0xd   :  { %v56_v5 = vld [vmem:[#allocation5 + $0x50] sm:$0xff]  ;;  %v55_v6 = vld [vmem:[#allocation5 + $0x48] sm:$0xff]  ;;  %v54_v7 = vld [vmem:[#allocation5 + $0x40] sm:$0xff] }
   0xe   :  { %67 = vmatpush.msra.mxu0 %v60_v1  ;;  %v53_v8 = vld [vmem:[#allocation5 + $0x38] sm:$0xff]  ;;  %v52_v9 = vld [vmem:[#allocation5 + $0x30] sm:$0xff]  ;;  %v51_v10 = vld [vmem:[#allocation5 + $0x28] sm:$0xff] }
   0xf   :  { %v50_v11 = vld [vmem:[#allocation5 + $0x20] sm:$0xff]  ;;  %v49_v12 = vld [vmem:[#allocation5 + $0x18] sm:$0xff]  ;;  %v48_v13 = vld [vmem:[#allocation5 + $0x10] sm:$0xff] }
  0x10   :  { %68 = vmatpush.msra.mxu0 %v59_v2  ;;  %v47_v14 = vld [vmem:[#allocation5 + $0x8] sm:$0xff]  ;;  %v46_v15 = vld [vmem:[#allocation5] sm:$0xff]  ;;  %v45_v16 = vld [vmem:[#allocation2] sm:$0xff] }
  0x11   :  { %v110_v17 = vld [vmem:[%s228_s2] ss:$0 sm:$0xff] }
  0x12   :  { %69 = vmatpush.msra.mxu0 %v58_v3 }
  0x14   :  { %70 = vmatpush.msra.mxu0 %v57_v4 }
  0x16   :  { %71 = vmatpush.msra.mxu0 %v56_v5 }
  0x18   :  { %72 = vmatpush.msra.mxu0 %v55_v6 }
  0x1a   :  { %73 = vmatpush.msra.mxu0 %v54_v7 }
  0x1c   :  { %74 = vmatpush.msra.mxu0 %v53_v8 }
  0x1e   :  { %75 = vmatpush.msra.mxu0 %v52_v9 }
  0x20   :  { %76 = vmatpush.msra.mxu0 %v51_v10 }
  0x22   :  { %77 = vmatpush.msra.mxu0 %v50_v11 }
  0x24   :  { %78 = vmatpush.msra.mxu0 %v49_v12 }
  0x26   :  { %79 = vmatpush.msra.mxu0 %v48_v13 }
  0x28   :  { %80 = vmatpush.msra.mxu0 %v47_v14 }
  0x2a   :  { %81 = vmatpush.msra.mxu0 %v46_v15 }
  0x2b   :  { %82 = vmatmul.f32.vlgmr.msra.gmra.mxu0 %v45_v16 }
  0xa8   :  { %v83_v18 = vpop.f32.mrf.mxu0 }
  0xa9   :  { %v84_v19 = vadd.f32 %v110_v17, %v83_v18 }
  0xab   :  { %86 = vst [vmem:[#allocation7] sm:$0xff] %v84_v19 }
  0xac   :  { %97 = dma.vmem_to_hbm [thread:$0]  %s93_s25, 128, %s95_s28, [#allocation4]  }
  0xad   :  { %187 = dma.done.wait [#allocation4], 128  }
  0xae   :  { %188 = vsyncadd [#allocation4], 4294967168 }
  0xaf   :  { %102 = vsyncpa [#allocation3], 1 }
  0xb0   :  { %103 = vsyncpa [#allocation6], 1 }
  0xb1   :  { %104 = vsyncpa [#allocation4], 1 }

</bundles_post_ra>
